<compile_context>
chip_gen: v7x
topology: tpu7x:2x2x1
jax: 0.10.0
libtpu: 0.0.40
codegen_flags: <defaults>
</compile_context>

<pallas_src>
import jax
import jax.numpy as jnp
from jax.experimental import pallas as pl
from jax.experimental.pallas import tpu as pltpu


def _round_up(x, m):
    return ((x + m - 1) // m) * m


def planar_kernel(scalars_ref, z_ref, w_ref, u_hat_ref, fz_ref, ld_ref):
    """Per-tile hot path of the planar normalizing flow.

    scalars_ref : SMEM f32[2]   -> [b, w @ u_hat.T]  (parameter-only, hoisted)
    z_ref       : VMEM (TB, D)
    w_ref       : VMEM (1, D)   f32  (grid-resident)
    u_hat_ref   : VMEM (1, D)   f32  (grid-resident)
    fz_ref      : VMEM (TB, D)  out
    ld_ref      : VMEM (TB, 1)  out  (log|det J| per row)
    """
    b = scalars_ref[0]
    wu_hat = scalars_ref[1]

    z = z_ref[...].astype(jnp.float32)
    w = w_ref[...]
    u_hat = u_hat_ref[...]

    # a = z @ w.T + b as a VPU multiply + lane reduce (an MXU matmul with a
    # single output column would idle >99% of the systolic array).
    a = jnp.sum(z * w, axis=-1, keepdims=True) + b          # (TB, 1)
    t = jnp.tanh(a)                                          # (TB, 1)

    fz_ref[...] = (z + u_hat * t).astype(fz_ref.dtype)

    # psi @ u_hat.T == (1 - tanh^2) * (w @ u_hat.T)  (scalar factored out).
    det = 1.0 + (1.0 - t * t) * wu_hat                       # (TB, 1)
    ld_ref[...] = jnp.log(jnp.abs(det) + 1e-6)


def planar_transform(z, u, w, b, sum_log_abs_det_jacobians=0.0,
                     normalize_u=True, donate_z=False):
    """JAX wrapper matching PlanarTransform.forward(x, normalize_u=True)."""
    B, D = z.shape

    u32 = u.astype(jnp.float32)
    w32 = w.astype(jnp.float32)
    b32 = jnp.asarray(b, jnp.float32).reshape(())

    # ---- parameter-only math, O(D), computed once outside the tiled kernel ----
    u_hat = u32
    if normalize_u:
        wtu = jnp.sum(w32 * u32)                    # w @ u.T
        m_wtu = -1.0 + jax.nn.softplus(wtu)         # numerically stable softplus
        wtw = jnp.sum(w32 * w32)                    # ||w||^2 (same 0/0 hazard as torch)
        u_hat = u32 + (m_wtu - wtu) * w32 / wtw
    wu_hat = jnp.sum(w32 * u_hat)                   # scalar: w @ u_hat.T
    scalars = jnp.stack([b32, wu_hat])              # SMEM f32[2]

    # ---- batch-tile selection (no padding of z / fz; full-D feature block) ----
    itemsize = jnp.dtype(z.dtype).itemsize
    target_block_bytes = 2 * 1024 * 1024            # ~2 MiB z blocks
    rows_budget = max(8, (target_block_bytes // max(1, D * itemsize)) // 8 * 8)
    # Prefer >= 8 grid tiles (v7x megacore needs >= 2; more gives pipeline depth),
    # shrinking TB rather than running a 1-tile grid when B is moderate.
    rows_for_tiles = max(8, _round_up(pl.cdiv(B, 8), 8))
    TB = max(8, min(rows_budget, rows_for_tiles))
    if TB >= B:
        TB = B                                      # one full-extent block (exempt)
    num_tiles = pl.cdiv(B, TB)

    fz, ld = pl.pallas_call(
        planar_kernel,
        out_shape=(
            jax.ShapeDtypeStruct((B, D), z.dtype),
            jax.ShapeDtypeStruct((B, 1), jnp.float32),
        ),
        grid=(num_tiles,),
        in_specs=[
            pl.BlockSpec(memory_space=pltpu.MemorySpace.SMEM),   # [b, w@u_hat.T]
            pl.BlockSpec((TB, D), lambda i: (i, 0)),             # z tile (full D)
            pl.BlockSpec((1, D), lambda i: (0, 0)),              # w     (resident)
            pl.BlockSpec((1, D), lambda i: (0, 0)),              # u_hat (resident)
        ],
        out_specs=(
            pl.BlockSpec((TB, D), lambda i: (i, 0)),             # f_z tile
            pl.BlockSpec((TB, 1), lambda i: (i, 0)),             # logdet tile
        ),
        compiler_params=pltpu.CompilerParams(
            dimension_semantics=("parallel",),                   # megacore-friendly
        ),
        cost_estimate=pl.CostEstimate(
            flops=3 * B * D,
            transcendentals=2 * B,
            bytes_accessed=2 * B * D * itemsize + 4 * B + 8 * D,
        ),
        input_output_aliases=({1: 0} if donate_z else {}),
    )(scalars, z, w32, u_hat)

    log_abs_det_jacobian = ld[:, 0]                              # .squeeze() -> (B,)
    return fz, sum_log_abs_det_jacobians + log_abs_det_jacobian


def planar_reference(z, u, w, b):
    """Pure-JAX reference mirroring the PyTorch code (for verification)."""
    wtu = jnp.squeeze(w @ u.T)
    m_wtu = -1.0 + jnp.log1p(jnp.exp(wtu))
    u_hat = u + (m_wtu - wtu) * w / (w @ w.T)
    a = z @ w.T + b
    f_z = z + u_hat * jnp.tanh(a)
    psi = (1.0 - jnp.tanh(a) ** 2) @ w
    det = 1.0 + psi @ u_hat.T
    logdet = jnp.log(jnp.abs(det) + 1e-6).squeeze()
    return f_z, logdet


if __name__ == "__main__":
    # Deterministic synthetic parameters / inputs (matches __init__ shapes).
    input_size = 32
    batch = 8
    init_sigma = 0.01

    key = jax.random.PRNGKey(0)
    kz, ku, kw = jax.random.split(key, 3)
    z = jax.random.normal(kz, (batch, input_size), dtype=jnp.float32)
    u = init_sigma * jax.random.normal(ku, (1, input_size), dtype=jnp.float32)
    w = init_sigma * jax.random.normal(kw, (1, input_size), dtype=jnp.float32)
    b = jnp.zeros((1,), dtype=jnp.float32)

    f_z, sum_logdet = planar_transform(z, u, w, b)
    jax.block_until_ready((f_z, sum_logdet))

    f_ref, ld_ref_vals = planar_reference(z, u, w, b)
    assert f_z.shape == (batch, input_size)
    assert sum_logdet.shape == (batch,)
    assert jnp.allclose(f_z, f_ref, atol=1e-5, rtol=1e-5)
    assert jnp.allclose(sum_logdet, ld_ref_vals, atol=1e-5, rtol=1e-5)

    print("KERNEL_OK")
</pallas_src>

<mosaic_0001>
module attributes {stable_mosaic.version = 11 : i64} {
  func.func @planar_kernel(%arg0: i32, %arg1: memref<2xf32, #tpu.memory_space<smem>>, %arg2: memref<8x32xf32, #tpu.memory_space<vmem>>, %arg3: memref<1x32xf32, #tpu.memory_space<vmem>>, %arg4: memref<1x32xf32, #tpu.memory_space<vmem>>, %arg5: memref<8x32xf32, #tpu.memory_space<vmem>>, %arg6: memref<8x1xf32, #tpu.memory_space<vmem>>) attributes {dimension_semantics = [#tpu.dimension_semantics<parallel>], iteration_bounds = array<i64: 1>, scalar_prefetch = 0 : i64, scratch_operands = 0 : i64, tpu.core_type = #tpu.core_type<tc>, window_params = [{transform_indices = @transform_0, window_bounds = array<i64: 2>}, {transform_indices = @transform_1, window_bounds = array<i64: 8, 32>}, {pipeline_mode = #tpu.pipeline_mode<synchronous>, transform_indices = @transform_2, window_bounds = array<i64: 1, 32>}, {pipeline_mode = #tpu.pipeline_mode<synchronous>, transform_indices = @transform_3, window_bounds = array<i64: 1, 32>}, {transform_indices = @transform_4, window_bounds = array<i64: 8, 32>}, {transform_indices = @transform_5, window_bounds = array<i64: 8, 1>}]} {
    %c0 = arith.constant 0 : index
    %0 = memref.load %arg1[%c0] : memref<2xf32, #tpu.memory_space<smem>>
    %c1 = arith.constant 1 : index
    %1 = memref.load %arg1[%c1] : memref<2xf32, #tpu.memory_space<smem>>
    %c0_0 = arith.constant 0 : index
    %c0_1 = arith.constant 0 : index
    %2 = vector.load %arg2[%c0_0, %c0_1] : memref<8x32xf32, #tpu.memory_space<vmem>>, vector<8x32xf32>
    %c0_2 = arith.constant 0 : index
    %c0_3 = arith.constant 0 : index
    %3 = vector.load %arg3[%c0_2, %c0_3] : memref<1x32xf32, #tpu.memory_space<vmem>>, vector<1x32xf32>
    %c0_4 = arith.constant 0 : index
    %c0_5 = arith.constant 0 : index
    %4 = vector.load %arg4[%c0_4, %c0_5] : memref<1x32xf32, #tpu.memory_space<vmem>>, vector<1x32xf32>
    %5 = vector.broadcast %3 : vector<1x32xf32> to vector<8x32xf32>
    %6 = arith.mulf %2, %5 : vector<8x32xf32>
    %cst = arith.constant dense<0.000000e+00> : vector<8xf32>
    %7 = vector.multi_reduction <add>, %6, %cst [1] : vector<8x32xf32> to vector<8xf32>
    %8 = vector.shape_cast %7 : vector<8xf32> to vector<8x1xf32>
    %9 = vector.broadcast %0 : f32 to vector<8x1xf32>
    %10 = arith.addf %8, %9 : vector<8x1xf32>
    %11 = math.tanh %10 : vector<8x1xf32>
    %12 = vector.broadcast %4 : vector<1x32xf32> to vector<8x32xf32>
    %13 = vector.broadcast %11 : vector<8x1xf32> to vector<8x32xf32>
    %14 = arith.mulf %12, %13 : vector<8x32xf32>
    %15 = arith.addf %2, %14 : vector<8x32xf32>
    %c0_6 = arith.constant 0 : index
    %c0_7 = arith.constant 0 : index
    %16 = vector.load %arg5[%c0_6, %c0_7] : memref<8x32xf32, #tpu.memory_space<vmem>>, vector<8x32xf32>
    tpu.vector_store %arg5[%c0_6, %c0_7], %15 {strides = array<i32>} : memref<8x32xf32, #tpu.memory_space<vmem>>, vector<8x32xf32>,
    %17 = arith.mulf %11, %11 : vector<8x1xf32>
    %cst_8 = arith.constant 1.000000e+00 : f32
    %18 = vector.broadcast %cst_8 : f32 to vector<8x1xf32>
    %19 = arith.subf %18, %17 : vector<8x1xf32>
    %20 = vector.broadcast %1 : f32 to vector<8x1xf32>
    %21 = arith.mulf %19, %20 : vector<8x1xf32>
    %cst_9 = arith.constant 1.000000e+00 : f32
    %22 = vector.broadcast %cst_9 : f32 to vector<8x1xf32>
    %23 = arith.addf %22, %21 : vector<8x1xf32>
    %24 = math.absf %23 : vector<8x1xf32>
    %cst_10 = arith.constant 9.99999997E-7 : f32
    %25 = vector.broadcast %cst_10 : f32 to vector<8x1xf32>
    %26 = arith.addf %24, %25 : vector<8x1xf32>
    %27 = math.log %26 : vector<8x1xf32>
    %c0_11 = arith.constant 0 : index
    %c0_12 = arith.constant 0 : index
    %28 = vector.load %arg6[%c0_11, %c0_12] : memref<8x1xf32, #tpu.memory_space<vmem>>, vector<8x1xf32>
    tpu.vector_store %arg6[%c0_11, %c0_12], %27 {strides = array<i32>} : memref<8x1xf32, #tpu.memory_space<vmem>>, vector<8x1xf32>,
    return
  }
  func.func @transform_0(%arg0: i32) -> i32 {
    %c0_i32 = arith.constant 0 : i32
    %c0_i32_0 = arith.constant 0 : i32
    return %c0_i32 : i32
  }
  func.func @transform_1(%arg0: i32) -> (i32, i32) {
    %c0_i32 = arith.constant 0 : i32
    %c0_i32_0 = arith.constant 0 : i32
    return %arg0, %c0_i32 : i32, i32
  }
  func.func @transform_2(%arg0: i32) -> (i32, i32) {
    %c0_i32 = arith.constant 0 : i32
    %c0_i32_0 = arith.constant 0 : i32
    %c0_i32_1 = arith.constant 0 : i32
    return %c0_i32, %c0_i32_0 : i32, i32
  }
  func.func @transform_3(%arg0: i32) -> (i32, i32) {
    %c0_i32 = arith.constant 0 : i32
    %c0_i32_0 = arith.constant 0 : i32
    %c0_i32_1 = arith.constant 0 : i32
    return %c0_i32, %c0_i32_0 : i32, i32
  }
  func.func @transform_4(%arg0: i32) -> (i32, i32) {
    %c0_i32 = arith.constant 0 : i32
    %c0_i32_0 = arith.constant 0 : i32
    return %arg0, %c0_i32 : i32, i32
  }
  func.func @transform_5(%arg0: i32) -> (i32, i32) {
    %c0_i32 = arith.constant 0 : i32
    %c0_i32_0 = arith.constant 0 : i32
    return %arg0, %c0_i32 : i32, i32
  }
}

</mosaic_0001>

<bundles_post_ra>
// kernel: tpu_custom_call.1
= control target key start
LH: loop header
LB: loop body
LE: loop exit
PB: predicated region body
PF: predicated region fallthrough
CT: control target
= control target key end

     0   :  { %11 = vsyncpa [#allocation5], 0  ;;  %s252_s0 = inlined_call_operand.hbm [shape: f32[2], index: 0, kind: input, shape index: {}]   ;;  %s253_s1 = inlined_call_operand.hbm [shape: f32[8,32], index: 1, kind: input, shape index: {}]   ;;  %s254_s2 = inlined_call_operand.vmem [shape: f32[1,32], index: 2, kind: input, shape index: {}]   ;;  %s255_s3 = inlined_call_operand.vmem [shape: f32[1,32], index: 3, kind: input, shape index: {}]   ;;  %s256_s4 = inlined_call_operand.hbm [shape: f32[8,32], index: 4, kind: output, shape index: {0}]   ;;  %s257_s5 = inlined_call_operand.vmem [shape: f32[8,1], index: 5, kind: output, shape index: {1}]  }
   0x1   :  { %12 = vsyncpa [#allocation3], 0 }
   0x2   :  { %13 = vsyncpa [#allocation4], 0  ;;  %s112_s20 = scalar_lea.hbm %s252_s0, 16 }
   0x3   :  { %p113_p0 = scmp.ne.s32.totalorder %s252_s0, %s112_s20  ;;  %p116_p1 = scmp.lt.u32.totalorder %s112_s20, %s252_s0 }
   0x5   :  { %p118_p2 = pnand %p116_p1, %p113_p0 }
   0x7   :  { %121 = shalt.err (!%p118_p2)
}
   0x8   :  { %s172_s25 = smov [#allocation2]   ;;  %s173_s28 = smov [#allocation6]  }
   0x9   :  { %21 = dma.hbm_to_smem %s252_s0, 16, %s172_s25, [#allocation5]  }
   0xa   :  { %s28_s29 = sshll.u32 %s173_s28, 4  ;;  %s122_s7 = scalar_lea.hbm %s253_s1, 128  ;;  %s29_s29 = int_to_ptr.vmem [resolvable:$true] %s28_s29 }
   0xb   :  { %p123_p3 = scmp.ne.s32.totalorder %s253_s1, %s122_s7  ;;  %p126_p4 = scmp.lt.u32.totalorder %s122_s7, %s253_s1 }
   0xd   :  { %p128_p5 = pnand %p126_p4, %p123_p3 }
   0xf   :  { %131 = shalt.err (!%p128_p5)
}
  0x10   :  { %s132_s12 = scalar_lea.vmem %s29_s29, 128  ;;  %p137_p7 = scmp.lt.s32.totalorder %s29_s29, %s29_s29 }
  0x11   :  { %p133_p6 = scmp.ne.s32.totalorder %s29_s29, %s132_s12  ;;  %p138_p8 = scmp.lt.s32.totalorder %s132_s12, %s132_s12 }
  0x13   :  { %p139_p9 = por %p138_p8, %p137_p7 }
  0x15   :  { %p140_p10 = pnand %p139_p9, %p133_p6 }
  0x17   :  { %143 = shalt.err (!%p140_p10)
}
  0x18   :  { %31 = dma.hbm_to_vmem [thread:$0]  %s253_s1, 128, %s29_s29, [#allocation3]  }
  0x19   :  { %166 = dma.done.wait [#allocation5], 16  }
  0x1a   :  { %167 = vsyncadd [#allocation5], 4294967280 }
  0x1b   :  { %168 = dma.done.wait [#allocation3], 128  }
  0x1c   :  { %169 = vsyncadd [#allocation3], 4294967168 }
  0x1d   :  { %42 = sfence }
  0x1e   :  { %v45_v0 = vld [vmem:[#allocation6] sm:$0xff]  ;;  %vm55_vm0 = vcmask 261120   ;;  %s43_s16 = sld [smem:[#allocation2]]  ;;  %s102_s1 = sld [smem:[#allocation2 + $0x1]] }
  0x1f   :  { %v103_v1 = vld [vmem:[%s254_s2] ss:$0 sm:$0xff]  ;;  %s174_s19 = smov [#allocation7]  }
  0x20   :  { %v54_v2 = vmul.f32 %v103_v1, %v45_v0  ;;  %v104_v7 = vld [vmem:[%s255_s3] ss:$0 sm:$0xff]  ;;  %s88_s20 = sshll.u32 %s174_s19, 4  ;;  %s89_s20 = int_to_ptr.vmem [resolvable:$true] %s88_s20 }
  0x21   :  { %s144_s2 = scalar_lea.vmem %s89_s20, 128  ;;  %p149_p12 = scmp.lt.s32.totalorder %s89_s20, %s89_s20 }
  0x22   :  { %v56_v3 = vsel %vm55_vm0, %v54_v2, 0.0  ;;  %p145_p11 = scmp.ne.s32.totalorder %s89_s20, %s144_s2  ;;  %p150_p13 = scmp.lt.s32.totalorder %s144_s2, %s144_s2 }
  0x23   :  { %57 = vadd.xlane.f32.xlu0 %v56_v3 }
  0x24   :  { %v59_v4 = vstv %s43_s16  ;;  %v73_v11 = vstv %s102_s1  ;;  %p151_p0 = por %p150_p13, %p149_p12 }
  0x26   :  { %p152_p1 = pnand %p151_p0, %p145_p11 }
  0xb0   :  { %v58_v5 = vpop.xlane.xlu0 %57 }
  0xb1   :  { %v60_v6 = vadd.f32 %v59_v4, %v58_v5 }
  0xb3   :  { %108 = vtanh.f32 %v60_v6 }
  0xbd   :  { %v109_v8 = vpop.eup %108 }
  0xbe   :  { %v71_v9 = vmul.f32 %v109_v8, %v109_v8  ;;  %v68_v10 = vmul.f32 %v109_v8, %v104_v7 }
  0xc0   :  { %v72_v12 = vsub.f32 1.0, %v71_v9  ;;  %v69_v13 = vadd.f32 %v68_v10, %v45_v0 }
  0xc2   :  { %v74_v14 = vmul.f32 %v73_v11, %v72_v12  ;;  %70 = vst.msk [vmem:[#allocation7] sm:$0xff] %vm55_vm0, %v69_v13 }
  0xc3   :  { %155 = shalt.err (!%p152_p1)
}
  0xc4   :  { %s156_s22 = scalar_lea.hbm %s256_s4, 128 }
  0xc5   :  { %p157_p2 = scmp.ne.s32.totalorder %s256_s4, %s156_s22  ;;  %p160_p3 = scmp.lt.u32.totalorder %s156_s22, %s256_s4 }
  0xc7   :  { %p162_p4 = pnand %p160_p3, %p157_p2 }
  0xc9   :  { %165 = shalt.err (!%p162_p4)
}
  0xca   :  { %91 = dma.vmem_to_hbm [thread:$0]  %s89_s20, 128, %s256_s4, [#allocation4]   ;;  %v75_v15 = vadd.f32 1.0, %v74_v14  ;;  %vm80_vm1 = vcmask 7168  }
  0xcc   :  { %v76_v16 = vand.u32 2147483647, %v75_v15 }
  0xce   :  { %v77_v17 = vadd.f32 1e-06, %v76_v16 }
  0xd0   :  { %110 = vlog2.f32 %v77_v17 }
  0xda   :  { %v111_v18 = vpop.eup %110 }
  0xdb   :  { %v79_v19 = vmul.f32 0.6931472, %v111_v18 }
  0xdd   :  { %81 = vst.msk [vmem:[%s257_s5] sm:$0xff] %vm80_vm1, %v79_v19 }
  0xde   :  { %170 = dma.done.wait [#allocation4], 128  }
  0xdf   :  { %171 = vsyncadd [#allocation4], 4294967168 }
  0xe0   :  { %99 = vsyncpa [#allocation3], 1 }
  0xe1   :  { %100 = vsyncpa [#allocation4], 1 }
  0xe2   :  { %101 = vsyncpa [#allocation5], 1 }

</bundles_post_ra>
